<compile_context>
chip_gen: v5e
topology: v5e:2x2
jax: 0.10.0
libtpu: 0.0.40
codegen_flags: <defaults>
</compile_context>

<pallas_src>
import functools

import jax
import jax.numpy as jnp
from jax.experimental import pallas as pl
from jax.experimental.pallas import tpu as pltpu


def _conv2d_kernel(x_ref, b_ref, bias_ref, o_ref, *, bh, KH, stride, relu):
    """One (batch, H-tile) output block per grid step.

    x_ref:    (Hp, Wp*Cin)              whole padded image for this batch element
    b_ref:    (KH, Wp*Cin, W_out*Cout)  banded, scale-folded weights
    bias_ref: (1, W_out*Cout)           fused (conv + BN) bias, tiled over w
    o_ref:    (bh, W_out*Cout)          lane-dense output tile
    """
    wo_co = o_ref.shape[-1]
    # First padded-input row needed by this H-tile (before the kh offset).
    row0 = pl.multiple_of(pl.program_id(1) * (bh * stride), bh * stride)

    # Start from the broadcast bias, accumulate KH deep-contraction matmuls
    # (kw + Cin are folded into B, so each dot has depth Wp*Cin).
    acc = jnp.broadcast_to(bias_ref[...].astype(jnp.float32), (bh, wo_co))
    for kh in range(KH):
        if stride == 1:
            rows = x_ref[pl.ds(row0 + kh, bh), :]
        else:
            rows = x_ref[pl.ds(row0 + kh, bh, stride=stride), :]
        acc = acc + jnp.dot(rows.astype(b_ref.dtype), b_ref[kh],
                            preferred_element_type=jnp.float32)

    if relu:
        acc = jnp.maximum(acc, 0.0)
    o_ref[...] = acc.astype(o_ref.dtype)


def _pick_bh(h_out):
    """Largest multiple of 8 dividing H_out (<=128 rows); else whole H_out."""
    if h_out % 8 == 0:
        cap = min(h_out, 128)
        for bh in range(cap - cap % 8, 0, -8):
            if h_out % bh == 0:
                return bh
    return h_out


def conv2d_forward(x_nchw, weight_oihw, conv_bias, *,
                   stride=1, relu=True, same_padding=False, bn_params=None,
                   compute_dtype=jnp.float32):
    """Mirrors Conv2d.forward: conv -> (bn, inference-style) -> (relu).  NCHW in/out."""
    N, Cin, H, W = x_nchw.shape
    Cout, Cin_w, KH, KW = weight_oihw.shape
    assert Cin == Cin_w
    pad_h = (KH - 1) // 2 if same_padding else 0
    pad_w = (KW - 1) // 2 if same_padding else 0
    H_out = (H + 2 * pad_h - KH) // stride + 1
    W_out = (W + 2 * pad_w - KW) // stride + 1
    Hp, Wp = H + 2 * pad_h, W + 2 * pad_w
    WpC = Wp * Cin
    WoCo = W_out * Cout

    # --- layout plumbing (wrapper-side, no conv FLOPs) ------------------------
    # NCHW -> NHWC -> zero pad -> lane-packed (N, Hp, Wp*Cin).
    x_nhwc = jnp.transpose(x_nchw, (0, 2, 3, 1))
    x_pad = jnp.pad(x_nhwc, ((0, 0), (pad_h, pad_h), (pad_w, pad_w), (0, 0)))
    x_packed = x_pad.reshape(N, Hp, WpC).astype(compute_dtype)

    # Fold conv bias and (optional, inference-style) batch-norm into scale/bias.
    # TODO(synk): training-mode BatchNorm (batch statistics) is not folded here.
    if bn_params is None:
        scale = jnp.ones((Cout,), jnp.float32)
        bias = conv_bias.astype(jnp.float32)
    else:
        gamma, beta, mean, var, eps = bn_params
        scale = gamma / jnp.sqrt(var + eps)
        bias = (conv_bias - mean) * scale + beta

    # OIHW -> HWIO, fold the scale into the weights (removes the per-element
    # VPU multiply from the kernel epilogue).
    w_hwio = jnp.transpose(weight_oihw, (2, 3, 1, 0)).astype(jnp.float32)
    w_scaled = w_hwio * scale[None, None, None, :]            # (KH, KW, Cin, Cout)

    # Banded weight via direct scatter (indices are unique, no collisions):
    #   B[kh, (wo*stride+kw)*Cin+ci, wo*Cout+co] = w_scaled[kh, kw, ci, co]
    wo = jnp.arange(W_out)
    kw = jnp.arange(KW)
    ci = jnp.arange(Cin)
    p = (wo[:, None, None] * stride + kw[None, :, None]) * Cin + ci[None, None, :]
    kh_idx = jnp.arange(KH)[:, None, None, None]                       # (KH,1,1,1)
    p_idx = jnp.broadcast_to(p[None], (KH, W_out, KW, Cin))
    wo_idx = jnp.broadcast_to(wo[None, :, None, None], (KH, W_out, KW, Cin))
    vals = jnp.broadcast_to(w_scaled[:, None], (KH, W_out, KW, Cin, Cout))
    B4 = jnp.zeros((KH, WpC, W_out, Cout), jnp.float32)
    B4 = B4.at[kh_idx, p_idx, wo_idx].set(vals)                 # (KH, WpC, W_out, Cout)
    B = B4.reshape(KH, WpC, WoCo).astype(compute_dtype)

    # Bias tiled over W_out so it lines up with the lane-packed output.
    bias_packed = jnp.tile(bias.astype(jnp.float32), (W_out,)).reshape(1, WoCo)

    # --- Pallas call ----------------------------------------------------------
    bh = _pick_bh(H_out)
    grid = (N, H_out // bh)

    kernel = functools.partial(_conv2d_kernel,
                               bh=bh, KH=KH, stride=stride, relu=relu)

    out_packed = pl.pallas_call(
        kernel,
        out_shape=jax.ShapeDtypeStruct((N, H_out, WoCo), x_nchw.dtype),
        grid_spec=pltpu.PrefetchScalarGridSpec(
            num_scalar_prefetch=0,
            grid=grid,
            in_specs=[
                # Padded image: resident per batch element (constant over h,
                # so no re-DMA across H-tiles).
                pl.BlockSpec((None, Hp, WpC), lambda n, h: (n, 0, 0)),
                # Banded weights + bias: resident for the whole grid.
                pl.BlockSpec((KH, WpC, WoCo), lambda n, h: (0, 0, 0)),
                pl.BlockSpec((1, WoCo), lambda n, h: (0, 0)),
            ],
            out_specs=pl.BlockSpec((None, bh, WoCo), lambda n, h: (n, h, 0)),
        ),
        compiler_params=pltpu.CompilerParams(
            dimension_semantics=("parallel", "parallel"),
            vmem_limit_bytes=32 * 1024 * 1024),
    )(x_packed, B, bias_packed)

    # Lane-packed (N, H_out, W_out*Cout) -> NCHW to match PyTorch convention.
    out_nhwc = out_packed.reshape(N, H_out, W_out, Cout)
    return jnp.transpose(out_nhwc, (0, 3, 1, 2))


if __name__ == "__main__":
    # Module config: Conv2d(in=4, out=8, kernel_size=3, stride=1,
    #                       relu=True, same_padding=True, bn=False)
    N, Cin, H, W = 2, 4, 16, 16
    Cout, K = 8, 3

    key = jax.random.PRNGKey(0)
    kx, kw_, kb = jax.random.split(key, 3)
    x = jax.random.normal(kx, (N, Cin, H, W), jnp.float32)
    fan_in = Cin * K * K
    bound = 1.0 / (fan_in ** 0.5)
    weight = jax.random.uniform(kw_, (Cout, Cin, K, K), jnp.float32,
                                -bound, bound)
    conv_bias = jax.random.uniform(kb, (Cout,), jnp.float32, -bound, bound)

    out = conv2d_forward(x, weight, conv_bias,
                         stride=1, relu=True, same_padding=True,
                         bn_params=None)
    out = jax.block_until_ready(out)

    # Sanity check against XLA's conv (same semantics as nn.Conv2d + ReLU).
    ref = jax.lax.conv_general_dilated(
        x, weight, window_strides=(1, 1), padding=((1, 1), (1, 1)),
        dimension_numbers=("NCHW", "OIHW", "NCHW"))
    ref = jnp.maximum(ref + conv_bias[None, :, None, None], 0.0)
    assert out.shape == (N, Cout, H, W)
    assert jnp.allclose(out, ref, atol=1e-4, rtol=1e-4)

    print("KERNEL_OK")
</pallas_src>

<mosaic_0001>
module attributes {stable_mosaic.version = 11 : i64} {
  func.func @_conv2d_kernel(%arg0: i32, %arg1: i32, %arg2: memref<1x18x72xf32, #tpu.memory_space<vmem>>, %arg3: memref<3x72x128xf32, #tpu.memory_space<vmem>>, %arg4: memref<1x128xf32, #tpu.memory_space<vmem>>, %arg5: memref<1x16x128xf32, #tpu.memory_space<vmem>>) attributes {dimension_semantics = [#tpu.dimension_semantics<parallel>, #tpu.dimension_semantics<parallel>], iteration_bounds = array<i64: 2, 1>, scalar_prefetch = 0 : i64, scratch_operands = 0 : i64, tpu.core_type = #tpu.core_type<tc>, window_params = [{transform_indices = @transform_0, window_bounds = array<i64: 1, 18, 72>}, {pipeline_mode = #tpu.pipeline_mode<synchronous>, transform_indices = @transform_1, window_bounds = array<i64: 3, 72, 128>}, {pipeline_mode = #tpu.pipeline_mode<synchronous>, transform_indices = @transform_2, window_bounds = array<i64: 1, 128>}, {transform_indices = @transform_3, window_bounds = array<i64: 1, 16, 128>}]} {
    %c16_i32 = arith.constant 16 : i32
    %0 = arith.muli %arg1, %c16_i32 : i32
    %1 = tpu.assume_multiple %0, 16 : i32
    %c0 = arith.constant 0 : index
    %c0_0 = arith.constant 0 : index
    %2 = vector.load %arg4[%c0, %c0_0] : memref<1x128xf32, #tpu.memory_space<vmem>>, vector<1x128xf32>
    %3 = vector.shape_cast %2 : vector<1x128xf32> to vector<1x128xf32>
    %4 = vector.broadcast %3 : vector<1x128xf32> to vector<16x128xf32>
    %c0_i32 = arith.constant 0 : i32
    %5 = arith.addi %1, %c0_i32 : i32
    %c0_1 = arith.constant 0 : index
    %6 = arith.index_cast %5 : i32 to index
    %c0_2 = arith.constant 0 : index
    %7 = vector.load %arg2[%c0_1, %6, %c0_2] : memref<1x18x72xf32, #tpu.memory_space<vmem>>, vector<1x16x72xf32>
    %8 = vector.shape_cast %7 : vector<1x16x72xf32> to vector<16x72xf32>
    %c0_3 = arith.constant 0 : index
    %c0_4 = arith.constant 0 : index
    %c0_5 = arith.constant 0 : index
    %9 = vector.load %arg3[%c0_3, %c0_4, %c0_5] : memref<3x72x128xf32, #tpu.memory_space<vmem>>, vector<1x72x128xf32>
    %10 = vector.shape_cast %9 : vector<1x72x128xf32> to vector<72x128xf32>
    %cst = arith.constant dense<0.000000e+00> : vector<16x128xf32>
    %11 = tpu.matmul %8, %10, %cst {dimension_numbers = #tpu.dot_dimension_numbers<[1], [0], [0], [1], [0, 0, 1, 1], [], []>} : vector<16x72xf32>, vector<72x128xf32>, vector<16x128xf32> -> vector<16x128xf32>
    %12 = arith.addf %4, %11 : vector<16x128xf32>
    %c1_i32 = arith.constant 1 : i32
    %13 = arith.addi %1, %c1_i32 : i32
    %c0_6 = arith.constant 0 : index
    %14 = arith.index_cast %13 : i32 to index
    %c0_7 = arith.constant 0 : index
    %15 = vector.load %arg2[%c0_6, %14, %c0_7] : memref<1x18x72xf32, #tpu.memory_space<vmem>>, vector<1x16x72xf32>
    %16 = vector.shape_cast %15 : vector<1x16x72xf32> to vector<16x72xf32>
    %c1 = arith.constant 1 : index
    %c0_8 = arith.constant 0 : index
    %c0_9 = arith.constant 0 : index
    %17 = vector.load %arg3[%c1, %c0_8, %c0_9] : memref<3x72x128xf32, #tpu.memory_space<vmem>>, vector<1x72x128xf32>
    %18 = vector.shape_cast %17 : vector<1x72x128xf32> to vector<72x128xf32>
    %cst_10 = arith.constant dense<0.000000e+00> : vector<16x128xf32>
    %19 = tpu.matmul %16, %18, %cst_10 {dimension_numbers = #tpu.dot_dimension_numbers<[1], [0], [0], [1], [0, 0, 1, 1], [], []>} : vector<16x72xf32>, vector<72x128xf32>, vector<16x128xf32> -> vector<16x128xf32>
    %20 = arith.addf %12, %19 : vector<16x128xf32>
    %c2_i32 = arith.constant 2 : i32
    %21 = arith.addi %1, %c2_i32 : i32
    %c0_11 = arith.constant 0 : index
    %22 = arith.index_cast %21 : i32 to index
    %c0_12 = arith.constant 0 : index
    %23 = vector.load %arg2[%c0_11, %22, %c0_12] : memref<1x18x72xf32, #tpu.memory_space<vmem>>, vector<1x16x72xf32>
    %24 = vector.shape_cast %23 : vector<1x16x72xf32> to vector<16x72xf32>
    %c2 = arith.constant 2 : index
    %c0_13 = arith.constant 0 : index
    %c0_14 = arith.constant 0 : index
    %25 = vector.load %arg3[%c2, %c0_13, %c0_14] : memref<3x72x128xf32, #tpu.memory_space<vmem>>, vector<1x72x128xf32>
    %26 = vector.shape_cast %25 : vector<1x72x128xf32> to vector<72x128xf32>
    %cst_15 = arith.constant dense<0.000000e+00> : vector<16x128xf32>
    %27 = tpu.matmul %24, %26, %cst_15 {dimension_numbers = #tpu.dot_dimension_numbers<[1], [0], [0], [1], [0, 0, 1, 1], [], []>} : vector<16x72xf32>, vector<72x128xf32>, vector<16x128xf32> -> vector<16x128xf32>
    %28 = arith.addf %20, %27 : vector<16x128xf32>
    %cst_16 = arith.constant 0.000000e+00 : f32
    %29 = vector.broadcast %cst_16 : f32 to vector<16x128xf32>
    %30 = arith.maximumf %28, %29 : vector<16x128xf32>
    %c0_17 = arith.constant 0 : index
    %c0_18 = arith.constant 0 : index
    %c0_19 = arith.constant 0 : index
    %31 = vector.load %arg5[%c0_17, %c0_18, %c0_19] : memref<1x16x128xf32, #tpu.memory_space<vmem>>, vector<1x16x128xf32>
    %32 = vector.shape_cast %31 : vector<1x16x128xf32> to vector<16x128xf32>
    %33 = vector.shape_cast %30 : vector<16x128xf32> to vector<1x16x128xf32>
    tpu.vector_store %arg5[%c0_17, %c0_18, %c0_19], %33 {strides = array<i32>} : memref<1x16x128xf32, #tpu.memory_space<vmem>>, vector<1x16x128xf32>,
    return
  }
  func.func @transform_0(%arg0: i32, %arg1: i32) -> (i32, i32, i32) {
    %c0_i32 = arith.constant 0 : i32
    %c0_i32_0 = arith.constant 0 : i32
    %c0_i32_1 = arith.constant 0 : i32
    return %arg0, %c0_i32, %c0_i32_0 : i32, i32, i32
  }
  func.func @transform_1(%arg0: i32, %arg1: i32) -> (i32, i32, i32) {
    %c0_i32 = arith.constant 0 : i32
    %c0_i32_0 = arith.constant 0 : i32
    %c0_i32_1 = arith.constant 0 : i32
    %c0_i32_2 = arith.constant 0 : i32
    return %c0_i32, %c0_i32_0, %c0_i32_1 : i32, i32, i32
  }
  func.func @transform_2(%arg0: i32, %arg1: i32) -> (i32, i32) {
    %c0_i32 = arith.constant 0 : i32
    %c0_i32_0 = arith.constant 0 : i32
    %c0_i32_1 = arith.constant 0 : i32
    return %c0_i32, %c0_i32_0 : i32, i32
  }
  func.func @transform_3(%arg0: i32, %arg1: i32) -> (i32, i32, i32) {
    %c0_i32 = arith.constant 0 : i32
    %c0_i32_0 = arith.constant 0 : i32
    return %arg0, %arg1, %c0_i32 : i32, i32, i32
  }
}

</mosaic_0001>

<bundles_post_ra>
// kernel: tpu_custom_call.1
= control target key start
LH: loop header
LB: loop body
LE: loop exit
PB: predicated region body
PF: predicated region fallthrough
CT: control target
= control target key end

     0   :  { %8 = vsyncpa [#allocation3], 0  ;;  %s814_s0 = inlined_call_operand.vmem [shape: f32[2,18,72], index: 0, kind: input, shape index: {}]   ;;  %s815_s1 = inlined_call_operand.hbm [shape: f32[3,72,128], index: 1, kind: input, shape index: {}]   ;;  %s816_s2 = inlined_call_operand.vmem [shape: f32[1,128], index: 2, kind: input, shape index: {}]   ;;  %s817_s3 = inlined_call_operand.hbm [shape: f32[2,16,128], index: 3, kind: output, shape index: {}]  }
   0x1   :  { %9 = vsyncpa [#allocation4], 0 }
   0x2   :  { %11 = vsyncpa [#allocation4 + $0x1], 0  ;;  %s700_s12 = smov 0   ;;  %s702_s13 = smov 0  }
   0x3   :  { %s704_s14 = smov 0   ;;  %s706_s15 = smov 0  }
   0x4   :  { %s708_s16 = smov 0   ;;  %s710_s17 = smov 0  }
   0x5 LB: > { %s455_s18 = sadd.s32 4294967295, %s673_s17   ;;  %s456_s19 = sadd.s32 4294967294, %s673_s17   ;;  %s673_s17 = sphi %s710_s17, %s17_s17   ;;  %s669_s16 = sphi %s708_s16, %s824_s16   ;;  %s665_s15 = sphi %s706_s15, %s823_s15   ;;  %s661_s14 = sphi %s704_s14, %s822_s14   ;;  %s657_s13 = sphi %s702_s13, %s821_s13   ;;  %s653_s12 = sphi %s700_s12, %s820_s12  }
   0x6   : > { %s29_s20 = sadd.s32 1, %s669_s16  ;;  %s106_s21 = sadd.s32 1, %s661_s14 }
   0x7   : > { %p31_p0 = scmp.ge.s32.totalorder %s29_s20, 2  ;;  %p116_p1 = scmp.ne.s32.totalorder %s661_s14, %s657_s13 }
   0x8   : > { %p117_p2 = scmp.eq.s32.totalorder %s455_s18, 1  ;;  %p122_p3 = scmp.ne.s32.totalorder %s657_s13, %s653_s12 }
   0x9   : > { %s826_s20 = smov (%p31_p0, %s29_s20), 0  ;;  %p123_p5 = scmp.eq.s32.totalorder %s456_s19, 1 }
   0xa   : > { %p740_p4 = por %p117_p2, %p116_p1  ;;  %s101_s23 = ssub.s32 %s669_s16, %s826_s20 }
   0xb   : > { %p457_p6 = scmp.ge.s32.totalorder %s673_s17, 1  ;;  %p104_p7 = scmp.eq.s32.totalorder %s101_s23, 0 }
   0xc   : > { %p747_p8 = por %p123_p5, %p122_p3  ;;  %p130_p9 = scmp.lt.s32.totalorder %s673_s17, 3 }
   0xd   : > { %s753_s25 = scalar_select %p104_p7, %s661_s14, %s106_s21  }
   0xe   : > { %p131_p10 = pnand %p457_p6, %p130_p9  ;;  %p504_p11 = scmp.eq.s32.totalorder %s455_s18, 0 }
   0xf   : > { %s141_s28 = sshll.u32 %s815_s1, 4  ;;  %s675_s29 = smov [#allocation2]   ;;  %s142_s28 = int_to_ptr.hbm [resolvable:$true] %s141_s28 }
  0x10   : > { %p496_p12 = pneg %p131_p10  ;;  %s143_s30 = sshll.u32 %s675_s29, 4  ;;  %s144_s30 = int_to_ptr.vmem [resolvable:$true] %s143_s30 }
  0x11   : > { %s676_s4 = smov 128   ;;  %s677_s5 = smov 8  }
  0x12   : > { %p497_p13 = pnand %p504_p11, %p496_p12  ;;  %170 = sbr.rel (%p131_p10) target bundleno = 190 (0xbe), region = 32 }
  0x14   : > { %499 = dma.hbm_to_vmem [thread:$0]  (!%p497_p13), %s142_s28, 3456, %s144_s30, [#allocation3], %s676_s4, %s676_s4, %s677_s5  }
  0x17   : > { %644 = dma.done.wait (%p504_p11), [#allocation3], 3456  }
  0x18   : > { %646 = vsyncadd (%p504_p11), [#allocation3], 4294963840  ;;  %v308_v0 = vld [vmem:[#allocation2 + $0xd0] sm:$0xff]  ;;  %v217_v1 = vld [vmem:[#allocation2 + $0x40] sm:$0xff]  ;;  %p195_p0 = scmp.lt.s32.totalorder %s665_s15, 1  ;;  %vm218_vm0 = vcmask 588800  }
  0x19   : > { %v307_v2 = vld [vmem:[#allocation2 + $0xc8] sm:$0xff]  ;;  %322 = vmatpush.msra.mxu2 %v308_v0  ;;  %232 = vmatpush.msra.mxu0 %v217_v1  ;;  %v216_v3 = vld [vmem:[#allocation2 + $0x38] sm:$0xff]  ;;  %v306_v5 = vld [vmem:[#allocation2 + $0xc0] sm:$0xff]  ;;  %s192_s19 = sand.u32 1, %s657_s13   ;;  %s479_s23 = sshll.u32 %s665_s15, 4 }
  0x1a   : > { %v263_v4 = vld [vmem:[#allocation2 + $0x88] sm:$0xff]  ;;  %480 = vmatpush.msra.mxu3 %v217_v1  ;;  %v215_v6 = vld [vmem:[#allocation2 + $0x30] sm:$0xff]  ;;  %v262_v7 = vld [vmem:[#allocation2 + $0x80] sm:$0xff]  ;;  %s762_s6 = scalar_select %p195_p0, %s665_s15, 1 }
  0x1b   : > { %277 = vmatpush.msra.mxu1 %v263_v4  ;;  %323 = vmatpush.msra.mxu2 %v307_v2  ;;  %v261_v8 = vld [vmem:[#allocation2 + $0x78] sm:$0xff]  ;;  %v214_v10 = vld [vmem:[#allocation2 + $0x28] sm:$0xff]  ;;  %v260_v11 = vld [vmem:[#allocation2 + $0x70] sm:$0xff]  ;;  %s462_s21 = sshll.u32 %s192_s19, 4  ;;  %s358_s28 = scalar_lea.hbm %s817_s3, %s479_s23 }
  0x1c   : > { %233 = vmatpush.msra.mxu0 %v216_v3  ;;  %481 = vmatpush.msra.mxu3 %v216_v3  ;;  %v305_v9 = vld [vmem:[#allocation2 + $0xb8] sm:$0xff]  ;;  %v304_v12 = vld [vmem:[#allocation2 + $0xb0] sm:$0xff]  ;;  %v213_v13 = vld [vmem:[#allocation2 + $0x20] sm:$0xff]  ;;  %s489_s7 = smul.u32 24, %s762_s6  ;;  %s194_s29 = scalar_lea.vmem [#allocation5], %s462_s21 }
  0x1d   : > { %278 = vmatpush.msra.mxu1 %v262_v7  ;;  %324 = vmatpush.msra.mxu2 %v306_v5  ;;  %v259_v14 = vld [vmem:[#allocation2 + $0x68] sm:$0xff]  ;;  %v212_v16 = vld [vmem:[#allocation2 + $0x18] sm:$0xff]  ;;  %v258_v17 = vld [vmem:[#allocation2 + $0x60] sm:$0xff]  ;;  %s359_s30 = sshll.u32 %s194_s29, 4  ;;  %s361_s4 = sshll.u32 %s358_s28, 4  ;;  %s360_s30 = int_to_ptr.vmem [resolvable:$true] %s359_s30  ;;  %s362_s4 = int_to_ptr.hbm [resolvable:$true] %s361_s4 }
  0x1e   : > { %234 = vmatpush.msra.mxu0 %v215_v6  ;;  %482 = vmatpush.msra.mxu3 %v215_v6  ;;  %v303_v15 = vld [vmem:[#allocation2 + $0xa8] sm:$0xff]  ;;  %v302_v18 = vld [vmem:[#allocation2 + $0xa0] sm:$0xff]  ;;  %v211_v19 = vld [vmem:[#allocation2 + $0x10] sm:$0xff]  ;;  %s199_s10 = scalar_lea.vmem %s814_s0, %s489_s7  ;;  %s345_s15 = scalar_lea.sflag [#allocation4], %s192_s19 }
  0x1f   : > { %279 = vmatpush.msra.mxu1 %v261_v8  ;;  %325 = vmatpush.msra.mxu2 %v305_v9  ;;  %v257_v20 = vld [vmem:[#allocation2 + $0x58] sm:$0xff]  ;;  %v210_v22 = vld [vmem:[#allocation2 + $0x8] sm:$0xff]  ;;  %v256_v23 = vld [vmem:[#allocation2 + $0x50] sm:$0xff]  ;;  %s605_s5 = sshra.s32 %s362_s4, 4  ;;  %s611_s9 = scalar_lea.hbm %s817_s3, 32  ;;  %s606_s5 = int_to_ptr.hbm [resolvable:$true] %s605_s5 }
  0x20   : > { %235 = vmatpush.msra.mxu0 %v214_v10  ;;  %483 = vmatpush.msra.mxu3 %v214_v10  ;;  %v301_v21 = vld [vmem:[#allocation2 + $0x98] sm:$0xff]  ;;  %v300_v24 = vld [vmem:[#allocation2 + $0x90] sm:$0xff]  ;;  %v209_v25 = vld [vmem:[#allocation2] sm:$0xff]  ;;  %s607_s6 = scalar_lea.hbm %s606_s5, 16  ;;  %p612_p5 = scmp.lt.s32.totalorder %s606_s5, %s817_s3 }
  0x21   : > { %280 = vmatpush.msra.mxu1 %v260_v11  ;;  %326 = vmatpush.msra.mxu2 %v304_v12  ;;  %v470_v26 = vld [vmem:[%s199_s10 + $0x2] sm:$0xff]  ;;  %v471_v31 = vld [vmem:[%s199_s10 + $0xa] sm:$0xff]  ;;  %v560_v33 = vld [vmem:[%s816_s2] ss:$0 sm:$0xff]  ;;  %p608_p1 = scmp.ne.s32.totalorder %s606_s5, %s607_s6  ;;  %p613_p6 = scmp.lt.s32.totalorder %s611_s9, %s607_s6 }
  0x22   : > { %236 = vmatpush.msra.mxu0 %v213_v13  ;;  %484 = vmatpush.msra.mxu3 %v213_v13  ;;  %v207_v27 = vld [vmem:[%s199_s10] sm:$0xff]  ;;  %v255_v28 = vld [vmem:[#allocation2 + $0x48] sm:$0xff] }
  0x23   : > { %281 = vmatpush.msra.mxu1 %v259_v14  ;;  %327 = vmatpush.msra.mxu2 %v303_v15  ;;  %v208_v29 = vld [vmem:[%s199_s10 + $0x8] sm:$0xff]  ;;  %p609_p2 = pnand %p608_p1, %p740_p4  ;;  %p614_p7 = por %p613_p6, %p612_p5 }
  0x24   : > { %237 = vmatpush.msra.mxu0 %v212_v16  ;;  %485 = vmatpush.msra.mxu3 %v212_v16  ;;  %v466_v30 = vld [vmem:[%s199_s10 + $0x1] sm:$0xff]  ;;  %v467_v32 = vld [vmem:[%s199_s10 + $0x9] sm:$0xff] }
  0x25   : > { %282 = vmatpush.msra.mxu1 %v258_v17  ;;  %328 = vmatpush.msra.mxu2 %v302_v18  ;;  %p610_p3 = pneg %p609_p2 }
  0x26   : > { %238 = vmatpush.msra.mxu0 %v211_v19  ;;  %486 = vmatpush.msra.mxu3 %v211_v19 }
  0x27   : > { %283 = vmatpush.msra.mxu1 %v257_v20  ;;  %329 = vmatpush.msra.mxu2 %v301_v21  ;;  %p615_p9 = pnand %p614_p7, %p610_p3 }
  0x28   : > { %239 = vmatpush.msra.mxu0 %v210_v22  ;;  %487 = vmatpush.msra.mxu3 %v210_v22 }
  0x29   : > { %284 = vmatpush.msra.mxu1 %v256_v23  ;;  %330 = vmatpush.msra.mxu2 %v300_v24 }
  0x2a   : > { %240 = vmatpush.msra.mxu0 %v209_v25  ;;  %472 = vmatmul.msk.f32.vlgmr.msra.gmra.mxu2 %vm218_vm0, %v470_v26 }
  0x2b   : > { %464 = vmatmul.msk.f32.vlgmr.msra.gmra.mxu0 %vm218_vm0, %v207_v27  ;;  %488 = vmatpush.msra.mxu3 %v209_v25 }
  0x2c   : > { %285 = vmatpush.msra.mxu1 %v255_v28  ;;  %465 = vmatmul.msk.f32.vlgmr.msra.gmra.mxu3 %vm218_vm0, %v208_v29 }
  0x2d   : > { %468 = vmatmul.msk.f32.vlgmr.msra.gmra.mxu1 %vm218_vm0, %v466_v30 }
  0x32   : > { %473 = vmatmul.msk.f32.gmra.mxu2 %vm218_vm0, %v471_v31 }
  0x35   : > { %469 = vmatmul.msk.f32.gmra.mxu1 %vm218_vm0, %v467_v32 }
  0xa8   : > { %v242_v34 = vpop.f32.mrf.mxu0 }
  0xa9   : > { %v248_v35 = vadd.f32 %v560_v33, %v242_v34 }
  0xaa   : > { %v287_v36 = vpop.f32.mrf.mxu1 }
  0xab   : > { %v293_v37 = vadd.f32 %v287_v36, %v248_v35 }
  0xad   : > { %v332_v38 = vpop.f32.mrf.mxu2 }
  0xae   : > { %v338_v39 = vadd.f32 %v332_v38, %v293_v37 }
  0xaf   : > { %v245_v40 = vpop.f32.mrf.mxu3 }
  0xb0   : > { %v340_v41 = vmax.f32 %v338_v39, 0.0  ;;  %v249_v42 = vadd.f32 %v560_v33, %v245_v40 }
  0xb2   : > { %v290_v43 = vpop.f32.mrf.mxu1  ;;  %342 = vst [vmem:[%s194_s29] sm:$0xff] %v340_v41 }
  0xb3   : > { %v294_v44 = vadd.f32 %v290_v43, %v249_v42 }
  0xb5   : > { %v335_v45 = vpop.f32.mrf.mxu2 }
  0xb6   : > { %v339_v46 = vadd.f32 %v335_v45, %v294_v44 }
  0xb8   : > { %v341_v47 = vmax.f32 %v339_v46, 0.0 }
  0xba   : > { %343 = vst [vmem:[%s194_s29 + $0x8] sm:$0xff] %v341_v47 }
  0xbb   : > { %618 = shalt.err (!%p615_p9)
}
  0xbc   : > { %s678_s18 = smov 128   ;;  %s679_s19 = smov 8  }
  0xbd   : > { %494 = dma.vmem_to_hbm [thread:$0]  (%p740_p4), %s360_s30, 256, %s362_s4, %s345_s15, %s678_s18, %s678_s18, %s679_s19  }
  0xbe PF: > { %p506_p10 = scmp.ge.s32.totalorder %s673_s17, 2  ;;  %s376_s21 = sand.u32 1, %s653_s12  }
  0xbf   : > { %s377_s23 = scalar_lea.sflag [#allocation4], %s376_s21 }
  0xc0   : > { %p501_p11 = pnand %p506_p10, %p747_p8 }
  0xc2   : > { %p502_p12 = pneg %p501_p11 }
  0xc4   : > { %648 = dma.done.wait (%p502_p12), %s377_s23, 256  }
  0xc5   : > { %650 = vsyncadd (%p502_p12), %s377_s23, 4294967040  ;;  %s17_s17 = sadd.s32 1, %s673_s17   ;;  %s820_s12 = smov %s657_s13 }
  0xc6   : > { %p14_p13 = scmp.ge.s32.totalorder %s17_s17, 4   ;;  %s821_s13 = smov %s661_s14 }
  0xc7   : > { %s822_s14 = smov %s753_s25  ;;  %s823_s15 = smov %s669_s16 }
  0xc8   : > { %s824_s16 = smov %s826_s20  ;;  %16 = sbr.rel (!%p14_p13) target bundleno = 5 (0x5), region = 77 }
  0xcd   :  { %383 = vsyncpa [#allocation3], 1 }
  0xce   :  { %385 = vsyncpa [#allocation3 + $0x1], 1 }
  0xcf   :  { %386 = vsyncpa [#allocation4], 1 }
  0xd0   :  { %388 = vsyncpa [#allocation4 + $0x1], 1 }

</bundles_post_ra>
